<compile_context>
chip_gen: v7x
topology: tpu7x:2x2x1
jax: 0.10.0
libtpu: 0.0.40
codegen_flags: <defaults>
</compile_context>

<pallas_src>
import jax
import jax.numpy as jnp
from jax.experimental import pallas as pl
from jax.experimental.pallas import tpu as pltpu

NEG_INF = -1e30


def _pointer_kernel(m1_ref, m2_ref, m3_ref, mask_ref, w1_ref, w2_ref, w3_ref,
                    out_ref):
    # m*_ref : (Bt, D, L)   mask_ref : (Bt, 1, L)   w*_ref : (D, 1)
    w1 = w1_ref[...]
    w2 = w2_ref[...]
    w3 = w3_ref[...]

    # 1x1 conv over the concatenated channel dim == sum_i  w_i[d] * M_i[:, d, :]
    prod = m1_ref[...] * w1 + m2_ref[...] * w2 + m3_ref[...] * w3     # (Bt, D, L)  VPU
    logits = jnp.sum(prod, axis=1, keepdims=True)                     # (Bt, 1, L)  XLU reduce

    mask = mask_ref[...]                                              # (Bt, 1, L)
    # QANet-style mask_logits: keep where mask==1, else -1e30
    out_ref[...] = logits * mask + (1.0 - mask) * NEG_INF


def _pick_block_b(B, block_b):
    # largest divisor of B that is <= block_b
    bt = min(block_b, B)
    while B % bt != 0:
        bt -= 1
    return bt


def pointer_forward(M1, M2, M3, mask, conv_weight, *, block_b=8):
    """Pallas implementation of Pointer.forward.

    M1, M2, M3 : (B, D, L) float
    mask       : (B, L) float (1 = keep, 0 = mask out)
    conv_weight: (1, 3*D, 1) torch Conv1d(3D, 1, kernel_size=1, bias=False) weight
    returns    : (B, L) masked logits
    """
    B, D, L = M1.shape
    f32 = jnp.float32

    w = conv_weight.reshape(3 * D).astype(f32)
    w1 = w[0:D].reshape(D, 1)
    w2 = w[D:2 * D].reshape(D, 1)
    w3 = w[2 * D:3 * D].reshape(D, 1)
    mask3 = mask.reshape(B, 1, L).astype(f32)

    Bt = _pick_block_b(B, block_b)
    grid = (B // Bt,)

    in_specs = [
        pl.BlockSpec((Bt, D, L), lambda b: (b, 0, 0)),   # M1
        pl.BlockSpec((Bt, D, L), lambda b: (b, 0, 0)),   # M2
        pl.BlockSpec((Bt, D, L), lambda b: (b, 0, 0)),   # M3
        pl.BlockSpec((Bt, 1, L), lambda b: (b, 0, 0)),   # mask
        pl.BlockSpec((D, 1), lambda b: (0, 0)),          # w chunk for M1
        pl.BlockSpec((D, 1), lambda b: (0, 0)),          # w chunk for M2
        pl.BlockSpec((D, 1), lambda b: (0, 0)),          # w chunk for M3
    ]
    out_specs = pl.BlockSpec((Bt, 1, L), lambda b: (b, 0, 0))
    out_shape = jax.ShapeDtypeStruct((B, 1, L), f32)

    y = pl.pallas_call(
        _pointer_kernel,
        grid=grid,
        in_specs=in_specs,
        out_specs=out_specs,
        out_shape=out_shape,
        compiler_params=pltpu.CompilerParams(
            dimension_semantics=("parallel",)),   # batch axis independent -> v7x 2-TC split
    )(M1.astype(f32), M2.astype(f32), M3.astype(f32), mask3, w1, w2, w3)

    # TODO(synk): torch .squeeze() would also drop the batch dim when B == 1;
    # here we always return (B, L).
    return y.reshape(B, L)


if __name__ == "__main__":
    key = jax.random.PRNGKey(0)
    kw, k1, k2, k3 = jax.random.split(key, 4)

    B, D, L = 8, 64, 128

    # Xavier-uniform init of Conv1d(3D, 1, kernel_size=1, bias=False) weight (1, 3D, 1)
    bound = (6.0 / (3 * D + 1)) ** 0.5
    conv_weight = jax.random.uniform(kw, (1, 3 * D, 1), jnp.float32, -bound, bound)

    M1 = jax.random.normal(k1, (B, D, L), jnp.float32)
    M2 = jax.random.normal(k2, (B, D, L), jnp.float32)
    M3 = jax.random.normal(k3, (B, D, L), jnp.float32)

    lens = jnp.array([128, 121, 96, 50, 128, 33, 120, 1])
    mask = (jnp.arange(L)[None, :] < lens[:, None]).astype(jnp.float32)   # (B, L)

    y = pointer_forward(M1, M2, M3, mask, conv_weight, block_b=4)
    jax.block_until_ready(y)

    # Pure-JAX reference of the torch forward pass.
    w_flat = conv_weight.reshape(3 * D)
    X1 = jnp.concatenate([M1, M2, M3], axis=1)                            # (B, 3D, L)
    ref = jnp.einsum("c,bcl->bl", w_flat, X1)
    ref = ref * mask + (1.0 - mask) * NEG_INF

    assert y.shape == (B, L)
    assert bool(jnp.all(jnp.isfinite(y)))
    max_err = float(jnp.max(jnp.abs(y - ref)))
    assert max_err < 1e-3, f"mismatch vs reference: {max_err}"
    print("KERNEL_OK")
</pallas_src>

<mosaic_0001>
module attributes {stable_mosaic.version = 11 : i64} {
  func.func @_pointer_kernel(%arg0: i32, %arg1: memref<4x64x128xf32, #tpu.memory_space<vmem>>, %arg2: memref<4x64x128xf32, #tpu.memory_space<vmem>>, %arg3: memref<4x64x128xf32, #tpu.memory_space<vmem>>, %arg4: memref<4x1x128xf32, #tpu.memory_space<vmem>>, %arg5: memref<64x1xf32, #tpu.memory_space<vmem>>, %arg6: memref<64x1xf32, #tpu.memory_space<vmem>>, %arg7: memref<64x1xf32, #tpu.memory_space<vmem>>, %arg8: memref<4x1x128xf32, #tpu.memory_space<vmem>>) attributes {dimension_semantics = [#tpu.dimension_semantics<parallel>], iteration_bounds = array<i64: 2>, scalar_prefetch = 0 : i64, scratch_operands = 0 : i64, tpu.core_type = #tpu.core_type<tc>, window_params = [{transform_indices = @transform_0, window_bounds = array<i64: 4, 64, 128>}, {transform_indices = @transform_1, window_bounds = array<i64: 4, 64, 128>}, {transform_indices = @transform_2, window_bounds = array<i64: 4, 64, 128>}, {transform_indices = @transform_3, window_bounds = array<i64: 4, 1, 128>}, {pipeline_mode = #tpu.pipeline_mode<synchronous>, transform_indices = @transform_4, window_bounds = array<i64: 64, 1>}, {pipeline_mode = #tpu.pipeline_mode<synchronous>, transform_indices = @transform_5, window_bounds = array<i64: 64, 1>}, {pipeline_mode = #tpu.pipeline_mode<synchronous>, transform_indices = @transform_6, window_bounds = array<i64: 64, 1>}, {transform_indices = @transform_7, window_bounds = array<i64: 4, 1, 128>}]} {
    %c0 = arith.constant 0 : index
    %c0_0 = arith.constant 0 : index
    %0 = vector.load %arg5[%c0, %c0_0] : memref<64x1xf32, #tpu.memory_space<vmem>>, vector<64x1xf32>
    %c0_1 = arith.constant 0 : index
    %c0_2 = arith.constant 0 : index
    %1 = vector.load %arg6[%c0_1, %c0_2] : memref<64x1xf32, #tpu.memory_space<vmem>>, vector<64x1xf32>
    %c0_3 = arith.constant 0 : index
    %c0_4 = arith.constant 0 : index
    %2 = vector.load %arg7[%c0_3, %c0_4] : memref<64x1xf32, #tpu.memory_space<vmem>>, vector<64x1xf32>
    %c0_5 = arith.constant 0 : index
    %c0_6 = arith.constant 0 : index
    %c0_7 = arith.constant 0 : index
    %3 = vector.load %arg1[%c0_5, %c0_6, %c0_7] : memref<4x64x128xf32, #tpu.memory_space<vmem>>, vector<4x64x128xf32>
    %4 = vector.shape_cast %0 : vector<64x1xf32> to vector<1x64x1xf32>
    %5 = vector.broadcast %4 : vector<1x64x1xf32> to vector<4x64x128xf32>
    %6 = arith.mulf %3, %5 : vector<4x64x128xf32>
    %c0_8 = arith.constant 0 : index
    %c0_9 = arith.constant 0 : index
    %c0_10 = arith.constant 0 : index
    %7 = vector.load %arg2[%c0_8, %c0_9, %c0_10] : memref<4x64x128xf32, #tpu.memory_space<vmem>>, vector<4x64x128xf32>
    %8 = vector.shape_cast %1 : vector<64x1xf32> to vector<1x64x1xf32>
    %9 = vector.broadcast %8 : vector<1x64x1xf32> to vector<4x64x128xf32>
    %10 = arith.mulf %7, %9 : vector<4x64x128xf32>
    %11 = arith.addf %6, %10 : vector<4x64x128xf32>
    %c0_11 = arith.constant 0 : index
    %c0_12 = arith.constant 0 : index
    %c0_13 = arith.constant 0 : index
    %12 = vector.load %arg3[%c0_11, %c0_12, %c0_13] : memref<4x64x128xf32, #tpu.memory_space<vmem>>, vector<4x64x128xf32>
    %13 = vector.shape_cast %2 : vector<64x1xf32> to vector<1x64x1xf32>
    %14 = vector.broadcast %13 : vector<1x64x1xf32> to vector<4x64x128xf32>
    %15 = arith.mulf %12, %14 : vector<4x64x128xf32>
    %16 = arith.addf %11, %15 : vector<4x64x128xf32>
    %cst = arith.constant dense<0.000000e+00> : vector<4x128xf32>
    %17 = vector.multi_reduction <add>, %16, %cst [1] : vector<4x64x128xf32> to vector<4x128xf32>
    %18 = vector.shape_cast %17 : vector<4x128xf32> to vector<4x1x128xf32>
    %c0_14 = arith.constant 0 : index
    %c0_15 = arith.constant 0 : index
    %c0_16 = arith.constant 0 : index
    %19 = vector.load %arg4[%c0_14, %c0_15, %c0_16] : memref<4x1x128xf32, #tpu.memory_space<vmem>>, vector<4x1x128xf32>
    %20 = arith.mulf %18, %19 : vector<4x1x128xf32>
    %cst_17 = arith.constant 1.000000e+00 : f32
    %21 = vector.broadcast %cst_17 : f32 to vector<4x1x128xf32>
    %22 = arith.subf %21, %19 : vector<4x1x128xf32>
    %cst_18 = arith.constant -1.000000e+30 : f32
    %23 = vector.broadcast %cst_18 : f32 to vector<4x1x128xf32>
    %24 = arith.mulf %22, %23 : vector<4x1x128xf32>
    %25 = arith.addf %20, %24 : vector<4x1x128xf32>
    %c0_19 = arith.constant 0 : index
    %c0_20 = arith.constant 0 : index
    %c0_21 = arith.constant 0 : index
    %26 = vector.load %arg8[%c0_19, %c0_20, %c0_21] : memref<4x1x128xf32, #tpu.memory_space<vmem>>, vector<4x1x128xf32>
    tpu.vector_store %arg8[%c0_19, %c0_20, %c0_21], %25 {strides = array<i32>} : memref<4x1x128xf32, #tpu.memory_space<vmem>>, vector<4x1x128xf32>,
    return
  }
  func.func @transform_0(%arg0: i32) -> (i32, i32, i32) {
    %c0_i32 = arith.constant 0 : i32
    %c0_i32_0 = arith.constant 0 : i32
    %c0_i32_1 = arith.constant 0 : i32
    return %arg0, %c0_i32, %c0_i32_0 : i32, i32, i32
  }
  func.func @transform_1(%arg0: i32) -> (i32, i32, i32) {
    %c0_i32 = arith.constant 0 : i32
    %c0_i32_0 = arith.constant 0 : i32
    %c0_i32_1 = arith.constant 0 : i32
    return %arg0, %c0_i32, %c0_i32_0 : i32, i32, i32
  }
  func.func @transform_2(%arg0: i32) -> (i32, i32, i32) {
    %c0_i32 = arith.constant 0 : i32
    %c0_i32_0 = arith.constant 0 : i32
    %c0_i32_1 = arith.constant 0 : i32
    return %arg0, %c0_i32, %c0_i32_0 : i32, i32, i32
  }
  func.func @transform_3(%arg0: i32) -> (i32, i32, i32) {
    %c0_i32 = arith.constant 0 : i32
    %c0_i32_0 = arith.constant 0 : i32
    %c0_i32_1 = arith.constant 0 : i32
    return %arg0, %c0_i32, %c0_i32_0 : i32, i32, i32
  }
  func.func @transform_4(%arg0: i32) -> (i32, i32) {
    %c0_i32 = arith.constant 0 : i32
    %c0_i32_0 = arith.constant 0 : i32
    %c0_i32_1 = arith.constant 0 : i32
    return %c0_i32, %c0_i32_0 : i32, i32
  }
  func.func @transform_5(%arg0: i32) -> (i32, i32) {
    %c0_i32 = arith.constant 0 : i32
    %c0_i32_0 = arith.constant 0 : i32
    %c0_i32_1 = arith.constant 0 : i32
    return %c0_i32, %c0_i32_0 : i32, i32
  }
  func.func @transform_6(%arg0: i32) -> (i32, i32) {
    %c0_i32 = arith.constant 0 : i32
    %c0_i32_0 = arith.constant 0 : i32
    %c0_i32_1 = arith.constant 0 : i32
    return %c0_i32, %c0_i32_0 : i32, i32
  }
  func.func @transform_7(%arg0: i32) -> (i32, i32, i32) {
    %c0_i32 = arith.constant 0 : i32
    %c0_i32_0 = arith.constant 0 : i32
    %c0_i32_1 = arith.constant 0 : i32
    return %arg0, %c0_i32, %c0_i32_0 : i32, i32, i32
  }
}

</mosaic_0001>

<bundles_post_ra>
// kernel: tpu_custom_call.1
= control target key start
LH: loop header
LB: loop body
LE: loop exit
PB: predicated region body
PF: predicated region fallthrough
CT: control target
= control target key end

     0   :  { %s1783_s0 = inlined_call_operand.hbm [shape: f32[8,64,128], index: 0, kind: input, shape index: {}]   ;;  %s1784_s1 = inlined_call_operand.hbm [shape: f32[8,64,128], index: 1, kind: input, shape index: {}]   ;;  %s1785_s2 = inlined_call_operand.hbm [shape: f32[8,64,128], index: 2, kind: input, shape index: {}]   ;;  %s1786_s3 = inlined_call_operand.vmem [shape: f32[8,1,128], index: 3, kind: input, shape index: {}]   ;;  %s1787_s4 = inlined_call_operand.vmem [shape: f32[64,1], index: 4, kind: input, shape index: {}]   ;;  %s1788_s5 = inlined_call_operand.vmem [shape: f32[64,1], index: 5, kind: input, shape index: {}]   ;;  %s1789_s6 = inlined_call_operand.vmem [shape: f32[64,1], index: 6, kind: input, shape index: {}]   ;;  %s1790_s7 = inlined_call_operand.hbm [shape: f32[8,1,128], index: 7, kind: output, shape index: {}]  }
   0x1   :  { %1801 = sst [smem:[#allocation15_spill]] %s1783_s0 }
   0x2   :  { %1802 = sst [smem:[#allocation16_spill]] %s1784_s1 }
   0x3   :  { %12 = vsyncpa [#allocation3], 0 }
   0x4   :  { %14 = vsyncpa [#allocation3 + $0x1], 0 }
   0x5   :  { %15 = vsyncpa [#allocation6], 0 }
   0x6   :  { %17 = vsyncpa [#allocation6 + $0x1], 0 }
   0x7   :  { %18 = vsyncpa [#allocation4], 0 }
   0x8   :  { %20 = vsyncpa [#allocation4 + $0x1], 0  ;;  %s1322_s24 = smov 0   ;;  %s1324_s25 = smov 0  }
   0x9   :  { %s1326_s26 = smov 0   ;;  %s1328_s27 = smov 0  }
   0xa LB: > { %1803 = sst [smem:[#allocation12_spill]] %s1271_s27  ;;  %s1343_s28 = sadd.s32 4294967295, %s1271_s27   ;;  %s1271_s27 = sphi %s1328_s27, %s1825_s27   ;;  %s1267_s26 = sphi %s1326_s26, %s1829_s26   ;;  %s1263_s25 = sphi %s1324_s25, %s1828_s25   ;;  %s1259_s24 = sphi %s1322_s24, %s1827_s24  }
   0xb   : > { %s1015_s29 = sadd.s32 4294967294, %s1271_s27   ;;  %s1347_s30 = sadd.s32 1, %s1271_s27  }
   0xc   : > { %1804 = sst [smem:[#allocation13_spill]] %s1347_s30  ;;  %s33_s8 = sadd.s32 1, %s1267_s26 }
   0xd   : > { %s30_s9 = ssub.s32 %s1271_s27, %s1347_s30  ;;  %p40_p0 = scmp.ne.s32.totalorder %s1267_s26, %s1263_s25 }
   0xe   : > { %p31_p1 = scmp.eq.s32.totalorder %s30_s9, 0  ;;  %p41_p2 = scmp.eq.s32.totalorder %s1271_s27, 0 }
   0xf   : > { %p46_p3 = scmp.ne.s32.totalorder %s1263_s25, %s1259_s24  ;;  %p47_p4 = scmp.eq.s32.totalorder %s1343_s28, 0 }
  0x10   : > { %s1359_s10 = scalar_select %p31_p1, %s1267_s26, %s33_s8  }
  0x11   : > { %p42_p5 = por %p41_p2, %p40_p0  ;;  %p1361_p6 = por %p47_p4, %p46_p3 }
  0x12   : > { %1805 = sst [smem:[#allocation14_spill]] %s1359_s10  ;;  %p211_p7 = scmp.eq.s32.totalorder %s1343_s28, 1 }
  0x13   : > { %s1806_s11 = scalar_select %p1361_p6, 1, 0 }
  0x14   : > { %p217_p8 = scmp.eq.s32.totalorder %s1015_s29, 1  ;;  %p1070_p10 = scmp.lt.s32.totalorder %s1271_s27, 2 }
  0x15   : > { %p1368_p11 = por %p211_p7, %p40_p0  ;;  %s1791_s14 = sand.u32 1, %s1267_s26  }
  0x16   : > { %p1372_p12 = por %p217_p8, %p46_p3  ;;  %s1378_s15 = sshll.u32 %s1271_s27, 12 }
  0x17   : > { %s1807_s12 = scalar_select %p1368_p11, 1, 0 }
  0x18   : > { %s1808_s13 = scalar_select %p1372_p12, 1, 0 }
  0x19   : > { %s1382_s16 = sshll.u32 %s1791_s14, 8  ;;  %p1384_p13 = pnand %p1070_p10, %p42_p5 }
  0x1a   : > { %s268_s18 = sand.u32 1, %s1271_s27   ;;  %s1810_s1 = sld [smem:[#allocation16_spill]] }
  0x1b   : > { %s272_s22 = scalar_lea.vmem [#allocation5], %s1382_s16  ;;  %s1399_s29 = scalar_lea.sflag [#allocation6], %s268_s18 }
  0x1c   : > { %s280_s23 = sshll.u32 %s272_s22, 4  ;;  %p1405_p2 = pneg %p1384_p13  ;;  %s1396_s23 = int_to_ptr.vmem [resolvable:$true] %s280_s23 }
  0x20   : > { %s1393_s21 = scalar_lea.hbm %s1810_s1, %s1378_s15  ;;  %s1116_s22 = scalar_lea.hbm %s1810_s1, 8192 }
  0x21   : > { %s1111_s8 = scalar_lea.hbm %s1393_s21, 4096  ;;  %p1117_p5 = scmp.lt.u32.totalorder %s1393_s21, %s1810_s1 }
  0x22   : > { %p1112_p1 = scmp.ne.s32.totalorder %s1393_s21, %s1111_s8  ;;  %p1118_p7 = scmp.lt.u32.totalorder %s1116_s22, %s1111_s8 }
  0x23   : > { %p1120_p10 = scmp.lt.u32.totalorder %s1111_s8, %s1393_s21 }
  0x24   : > { %p1114_p3 = pnand %p1405_p2, %p1112_p1  ;;  %p1119_p8 = por %p1118_p7, %p1117_p5 }
  0x26   : > { %p1115_p4 = pneg %p1114_p3  ;;  %p1121_p9 = por %p1120_p10, %p1119_p8 }
  0x28   : > { %p1122_p0 = pnand %p1121_p9, %p1115_p4 }
  0x2a   : > { %1125 = shalt.err (!%p1122_p0)
}
  0x2b   : > { %s1126_s18 = scalar_lea.vmem %s1396_s23, 4096  ;;  %s1273_s19 = smov [#allocation5]  }
  0x2c   : > { %p1127_p1 = scmp.ne.s32.totalorder %s1396_s23, %s1126_s18  ;;  %s1131_s20 = sshll.u32 %s1273_s19, 4  ;;  %s1132_s20 = int_to_ptr.vmem [resolvable:$false] %s1131_s20 }
  0x2d   : > { %s1133_s10 = scalar_lea.vmem %s1132_s20, 8192  ;;  %p1134_p11 = scmp.lt.s32.totalorder %s1396_s23, %s1132_s20 }
  0x2e   : > { %p1129_p3 = pnand %p1127_p1, %p1405_p2  ;;  %p1135_p6 = scmp.lt.s32.totalorder %s1133_s10, %s1126_s18 }
  0x30   : > { %p1130_p12 = pneg %p1129_p3  ;;  %p1136_p5 = por %p1135_p6, %p1134_p11 }
  0x32   : > { %p1137_p7 = pnand %p1136_p5, %p1130_p12 }
  0x34   : > { %1140 = shalt.err (!%p1137_p7)
}
  0x35   : > { %s1794_s14 = smov 128   ;;  %s1796_s8 = smov 8  }
  0x36   : > { %1062 = dma.hbm_to_vmem [thread:$0]  (!%p1384_p13), %s1393_s21, 4096, %s1396_s23, %s1399_s29, %s1794_s14, %s1794_s14, %s1796_s8  }
  0x37   : > { %p318_p6 = scmp.lt.s32.totalorder %s1271_s27, 3  ;;  %s1812_s0 = sld [smem:[#allocation15_spill]] }
  0x38   : > { %p1813_p9 = scmp.ge.s32.totalorder %s1271_s27, 1  ;;  %s250_s10 = scalar_lea.vmem [#allocation2], %s1382_s16 }
  0x39   : > { %s258_s1 = sshll.u32 %s250_s10, 4  ;;  %s1815_s21 = sand.u32 1, %s1267_s26   ;;  %s1446_s1 = int_to_ptr.vmem [resolvable:$true] %s258_s1 }
  0x3a   : > { %p1441_p11 = pnand %p1813_p9, %p318_p6  ;;  %s1450_s23 = scalar_lea.sflag [#allocation3], %s1815_s21 }
  0x3c   : > { %s1814_s20 = scalar_select %p1441_p11, 1, 0 }
  0x3d   : > { %s1437_s19 = scalar_lea.hbm %s1812_s0, %s1378_s15  ;;  %s1146_s8 = scalar_lea.hbm %s1812_s0, 8192 }
  0x3e   : > { %s1141_s14 = scalar_lea.hbm %s1437_s19, 4096  ;;  %p1147_p8 = scmp.lt.u32.totalorder %s1437_s19, %s1812_s0 }
  0x3f   : > { %p1142_p12 = scmp.ne.s32.totalorder %s1437_s19, %s1141_s14  ;;  %p1148_p10 = scmp.lt.u32.totalorder %s1146_s8, %s1141_s14 }
  0x40   : > { %p1150_p3 = scmp.lt.u32.totalorder %s1141_s14, %s1437_s19 }
  0x41   : > { %p1144_p0 = pnand %p1142_p12, %p1405_p2  ;;  %p1149_p1 = por %p1148_p10, %p1147_p8 }
  0x43   : > { %p1145_p4 = pneg %p1144_p0  ;;  %p1151_p5 = por %p1150_p3, %p1149_p1 }
  0x45   : > { %p1152_p7 = pnand %p1151_p5, %p1145_p4 }
  0x47   : > { %1155 = shalt.err (!%p1152_p7)
}
  0x48   : > { %s1156_s10 = scalar_lea.vmem %s1446_s1, 4096  ;;  %s1276_s21 = smov [#allocation2]  }
  0x49   : > { %p1157_p6 = scmp.ne.s32.totalorder %s1446_s1, %s1156_s10  ;;  %s1161_s22 = sshll.u32 %s1276_s21, 4  ;;  %s1162_s22 = int_to_ptr.vmem [resolvable:$false] %s1161_s22 }
  0x4a   : > { %s1163_s27 = scalar_lea.vmem %s1162_s22, 8192  ;;  %p1164_p0 = scmp.lt.s32.totalorder %s1446_s1, %s1162_s22 }
  0x4b   : > { %p1159_p9 = pnand %p1157_p6, %p1405_p2  ;;  %p1165_p11 = scmp.lt.s32.totalorder %s1163_s27, %s1156_s10 }
  0x4d   : > { %p1160_p12 = pneg %p1159_p9  ;;  %p1166_p8 = por %p1165_p11, %p1164_p0 }
  0x4f   : > { %p1167_p10 = pnand %p1166_p8, %p1160_p12 }
  0x51   : > { %1170 = shalt.err (!%p1167_p10)
}
  0x52   : > { %s1816_s30 = smov 8   ;;  %s1817_s14 = smov 128  }
  0x53   : > { %1059 = dma.hbm_to_vmem [thread:$0]  (!%p1384_p13), %s1437_s19, 4096, %s1446_s1, %s1450_s23, %s1817_s14, %s1817_s14, %s1816_s30  }
  0x54   : > { %s1481_s21 = scalar_lea.hbm %s1785_s2, %s1378_s15  ;;  %s294_s10 = scalar_lea.vmem [#allocation7], %s1382_s16 }
  0x55   : > { %s302_s22 = sshll.u32 %s294_s10, 4  ;;  %s1171_s27 = scalar_lea.hbm %s1481_s21, 4096  ;;  %s1484_s22 = int_to_ptr.vmem [resolvable:$true] %s302_s22 }
  0x56   : > { %p1172_p11 = scmp.ne.s32.totalorder %s1481_s21, %s1171_s27  ;;  %s1176_s19 = scalar_lea.hbm %s1785_s2, 8192 }
  0x57   : > { %p1177_p3 = scmp.lt.u32.totalorder %s1481_s21, %s1785_s2  ;;  %p1178_p5 = scmp.lt.u32.totalorder %s1176_s19, %s1171_s27 }
  0x58   : > { %p1174_p4 = pnand %p1172_p11, %p1405_p2  ;;  %p1180_p6 = scmp.lt.u32.totalorder %s1171_s27, %s1481_s21 }
  0x59   : > { %p1179_p7 = por %p1178_p5, %p1177_p3 }
  0x5a   : > { %p1175_p1 = pneg %p1174_p4 }
  0x5b   : > { %p1181_p9 = por %p1180_p6, %p1179_p7 }
  0x5d   : > { %p1182_p12 = pnand %p1181_p9, %p1175_p1 }
  0x5f   : > { %1185 = shalt.err (!%p1182_p12)
}
  0x60   : > { %s1186_s16 = scalar_lea.vmem %s1484_s22, 4096  ;;  %s1277_s0 = smov [#allocation7]  }
  0x61   : > { %p1187_p0 = scmp.ne.s32.totalorder %s1484_s22, %s1186_s16  ;;  %s1191_s8 = sshll.u32 %s1277_s0, 4  ;;  %s1192_s8 = int_to_ptr.vmem [resolvable:$false] %s1191_s8 }
  0x62   : > { %s1193_s18 = scalar_lea.vmem %s1192_s8, 8192  ;;  %p1194_p11 = scmp.lt.s32.totalorder %s1484_s22, %s1192_s8 }
  0x63   : > { %p1189_p8 = pnand %p1187_p0, %p1405_p2  ;;  %p1195_p4 = scmp.lt.s32.totalorder %s1193_s18, %s1186_s16 }
  0x65   : > { %p1190_p10 = pneg %p1189_p8  ;;  %p1196_p3 = por %p1195_p4, %p1194_p11 }
  0x67   : > { %p1197_p5 = pnand %p1196_p3, %p1190_p10 }
  0x69   : > { %1200 = shalt.err (!%p1197_p5)
}
  0x6a   : > { %1065 = dma.hbm_to_vmem [thread:$0]  (!%p1384_p13), %s1481_s21, 4096, %s1484_s22, %s1399_s29, %s1817_s14, %s1817_s14, %s1816_s30  }
  0x6b   : > { %p1818_p2 = scmp.ne.s32.totalorder %s1814_s20, 0 }
  0x6c   : > { %s1514_s9 = sand.u32 (!%p1818_p2), 1, %s1263_s25   ;;  %p1819_p1 = scmp.ne.s32.totalorder (!%p1818_p2), %s1806_s11, 0 }
  0x6d   : > { %322 = sbr.rel (%p1818_p2) target bundleno = 335 (0x14f), region = 48  ;;  %s1517_s10 = sshll.u32 (!%p1818_p2), %s1514_s9, 8 }
  0x6e   : > { %s325_s17 = scalar_lea.sflag (!%p1818_p2), [#allocation3], %s1514_s9  ;;  %s1521_s27 = scalar_lea.vmem (!%p1818_p2), [#allocation2], %s1517_s10 }
  0x74   : > { %1246 = dma.done.wait (%p1819_p1), %s325_s17, 4096  }
  0x75   : > { %1248 = vsyncadd (%p1819_p1), %s325_s17, 4294963200  ;;  %s333_s29 = sand.u32 1, %s1343_s28   ;;  %s1529_s30 = scalar_lea.vmem [#allocation5], %s1517_s10 }
  0x76   : > { %s334_s20 = scalar_lea.sflag [#allocation6], %s333_s29 }
  0x77   : > { %1250 = dma.done.wait (%p1819_p1), %s334_s20, 8192  }
  0x78   : > { %1252 = vsyncadd (%p1819_p1), %s334_s20, 4294959104  ;;  %v1278_v0 = vmov 0   ;;  %v408_v1 = vld [vmem:[%s1788_s5] sm:$0xff]  ;;  %v409_v3 = vld [vmem:[%s1788_s5 + $0x8] sm:$0xff]  ;;  %s1632_s1 = scalar_lea.vmem [#allocation7], %s1517_s10  ;;  %s1035_s10 = sshll.u32 %s1343_s28, 2 }
  0x79   : > { %1110 = vset.pattern.permute.xlu1 %v1278_v0  ;;  %1109 = vset.pattern.permute.xlu0 %v1278_v0  ;;  %v400_v2 = vld [vmem:[%s1787_s4] sm:$0xff]  ;;  %v401_v4 = vld [vmem:[%s1787_s4 + $0x8] sm:$0xff]  ;;  %v410_v5 = vld [vmem:[%s1788_s5 + $0x10] sm:$0xff]  ;;  %p1718_p13 = scmp.lt.s32.totalorder %s1035_s10, 7  ;;  %s1034_s15 = sshll.u32 %s1514_s9, 2 }
  0x7a   : > { %562 = vperm.xlu1 %1110, %v408_v1   ;;  %458 = vperm.xlu0 %1109, %v400_v2   ;;  %v402_v6 = vld [vmem:[%s1787_s4 + $0x10] sm:$0xff]  ;;  %v417_v7 = vld [vmem:[%s1789_s6 + $0x8] sm:$0xff]  ;;  %v416_v8 = vld [vmem:[%s1789_s6] sm:$0xff]  ;;  %s1047_s11 = sshll.u32 %s1343_s28, 6  ;;  %s390_s16 = scalar_lea.vmem [#allocation8], %s1034_s15 }
  0x7b   : > { %v411_v9 = vld [vmem:[%s1788_s5 + $0x18] sm:$0xff]  ;;  %v404_v11 = vld [vmem:[%s1787_s4 + $0x20] sm:$0xff]  ;;  %v418_v12 = vld [vmem:[%s1789_s6 + $0x10] sm:$0xff]  ;;  %s1831_s10 = smov (!%p1718_p13, %s1035_s10), 7  ;;  %s890_s0 = sshll.u32 %s390_s16, 4  ;;  %s1739_s0 = int_to_ptr.vmem [resolvable:$true] %s890_s0 }
  0x7c   : > { %v403_v10 = vld [vmem:[%s1787_s4 + $0x18] sm:$0xff]  ;;  %v412_v14 = vld [vmem:[%s1788_s5 + $0x20] sm:$0xff]  ;;  %v413_v15 = vld [vmem:[%s1788_s5 + $0x28] sm:$0xff]  ;;  %s397_s23 = scalar_lea.vmem %s1786_s3, %s1831_s10  ;;  %s1737_s17 = scalar_lea.hbm %s1790_s7, %s1047_s11 }
  0x7d   : > { %v419_v13 = vld [vmem:[%s1789_s6 + $0x18] sm:$0xff]  ;;  %v405_v16 = vld [vmem:[%s1787_s4 + $0x28] sm:$0xff]  ;;  %v406_v17 = vld [vmem:[%s1787_s4 + $0x30] sm:$0xff]  ;;  %s877_s28 = scalar_lea.sflag [#allocation4], %s1514_s9  ;;  %s1201_s29 = scalar_lea.vmem %s1739_s0, 64 }
  0x7e   : > { %567 = vperm.xlu1 %1110, %v409_v3   ;;  %463 = vperm.xlu0 %1109, %v401_v4   ;;  %v420_v18 = vld [vmem:[%s1789_s6 + $0x20] sm:$0xff]  ;;  %v421_v19 = vld [vmem:[%s1789_s6 + $0x28] sm:$0xff]  ;;  %v414_v20 = vld [vmem:[%s1788_s5 + $0x30] sm:$0xff]  ;;  %p1202_p7 = scmp.ne.s32.totalorder %s1739_s0, %s1201_s29  ;;  %p1821_p6 = scmp.ne.s32.totalorder %s1807_s12, 0 }
  0x7f   : > { %v415_v21 = vld [vmem:[%s1788_s5 + $0x38] sm:$0xff]  ;;  %v422_v24 = vld [vmem:[%s1789_s6 + $0x30] sm:$0xff]  ;;  %v528_v27 = vld [vmem:[%s1529_s30] sm:$0xff]  ;;  %s1279_s20 = smov [#allocation8]  }
  0x80   : > { %v407_v22 = vld [vmem:[%s1787_s4 + $0x38] sm:$0xff]  ;;  %v536_v28 = vld [vmem:[%s1529_s30 + $0x40] sm:$0xff]  ;;  %v529_v35 = vld [vmem:[%s1529_s30 + $0x8] sm:$0xff]  ;;  %p1203_p9 = pnand %p1202_p7, %p1821_p6  ;;  %s1205_s14 = sshll.u32 %s1279_s20, 4  ;;  %s1206_s14 = int_to_ptr.vmem [resolvable:$false] %s1205_s14 }
  0x81   : > { %v423_v23 = vld [vmem:[%s1789_s6 + $0x38] sm:$0xff]  ;;  %v544_v29 = vld [vmem:[%s1529_s30 + $0x80] sm:$0xff]  ;;  %v537_v38 = vld [vmem:[%s1529_s30 + $0x48] sm:$0xff]  ;;  %s1207_s21 = scalar_lea.vmem %s1206_s14, 128  ;;  %p1208_p0 = scmp.lt.s32.totalorder %s1739_s0, %s1206_s14 }
  0x82   : > { %572 = vperm.xlu1 %1110, %v410_v5   ;;  %468 = vperm.xlu0 %1109, %v402_v6   ;;  %v552_v30 = vld [vmem:[%s1529_s30 + $0xc0] sm:$0xff]  ;;  %v545_v39 = vld [vmem:[%s1529_s30 + $0x88] sm:$0xff]  ;;  %v530_v49 = vld [vmem:[%s1529_s30 + $0x10] sm:$0xff]  ;;  %p1204_p12 = pneg %p1203_p9  ;;  %p1209_p8 = scmp.lt.s32.totalorder %s1207_s21, %s1201_s29 }
  0x83   : > { %v424_v31 = vld [vmem:[%s1521_s27] sm:$0xff]  ;;  %v553_v40 = vld [vmem:[%s1529_s30 + $0xc8] sm:$0xff]  ;;  %v538_v50 = vld [vmem:[%s1529_s30 + $0x50] sm:$0xff] }
  0x84   : > { %v432_v32 = vld [vmem:[%s1521_s27 + $0x40] sm:$0xff]  ;;  %v425_v41 = vld [vmem:[%s1521_s27 + $0x8] sm:$0xff]  ;;  %v546_v55 = vld [vmem:[%s1529_s30 + $0x90] sm:$0xff]  ;;  %p1210_p10 = por %p1209_p8, %p1208_p0 }
  0x85   : > { %v440_v33 = vld [vmem:[%s1521_s27 + $0x80] sm:$0xff]  ;;  %v433_v42 = vld [vmem:[%s1521_s27 + $0x48] sm:$0xff]  ;;  %v554_v56 = vld [vmem:[%s1529_s30 + $0xd0] sm:$0xff] }
  0x86   : > { %703 = vperm.xlu1 %1110, %v417_v7   ;;  %698 = vperm.xlu0 %1109, %v416_v8   ;;  %v448_v34 = vld [vmem:[%s1521_s27 + $0xc0] sm:$0xff]  ;;  %v441_v43 = vld [vmem:[%s1521_s27 + $0x88] sm:$0xff]  ;;  %v426_v58 = vld [vmem:[%s1521_s27 + $0x10] sm:$0xff]  ;;  %p1211_p11 = pnand %p1210_p10, %p1204_p12 }
  0x87   : > { %v449_v48 = vld [vmem:[%s1521_s27 + $0xc8] sm:$0xff]  ;;  %v434_v0 = vld [vmem:[%s1521_s27 + $0x50] sm:$0xff] }
  0x88   : > { %v442_v1 = vld [vmem:[%s1521_s27 + $0x90] sm:$0xff] }
  0x89   : > { %v450_v2 = vld [vmem:[%s1521_s27 + $0xd0] sm:$0xff] }
  0x8a   : > { %577 = vperm.xlu1 %1110, %v411_v9   ;;  %473 = vperm.xlu0 %1109, %v403_v10  }
  0x8e   : > { %478 = vperm.xlu1 %1110, %v404_v11   ;;  %708 = vperm.xlu0 %1109, %v418_v12  }
  0x92   : > { %713 = vperm.xlu1 %1110, %v419_v13   ;;  %582 = vperm.xlu0 %1109, %v412_v14  }
  0x96   : > { %587 = vperm.xlu1 %1110, %v413_v15   ;;  %483 = vperm.xlu0 %1109, %v405_v16   ;;  %v665_v15 = vld [vmem:[%s1632_s1 + $0x8] sm:$0xff] }
  0x9a   : > { %488 = vperm.xlu1 %1110, %v406_v17   ;;  %718 = vperm.xlu0 %1109, %v420_v18   ;;  %v673_v18 = vld [vmem:[%s1632_s1 + $0x48] sm:$0xff] }
  0x9e   : > { %723 = vperm.xlu1 %1110, %v421_v19   ;;  %592 = vperm.xlu0 %1109, %v414_v20   ;;  %v681_v19 = vld [vmem:[%s1632_s1 + $0x88] sm:$0xff] }
  0x9f   : > { %v689_v20 = vld [vmem:[%s1632_s1 + $0xc8] sm:$0xff] }
  0xa2   : > { %597 = vperm.xlu1 %1110, %v415_v21   ;;  %493 = vperm.xlu0 %1109, %v407_v22  }
  0xa6   : > { %733 = vperm.xlu1 %1110, %v423_v23   ;;  %728 = vperm.xlu0 %1109, %v422_v24  }
  0xf9   : > { %v563_v25 = vpop.permute.xlu1 %562  ;;  %v459_v26 = vpop.permute.xlu0 %458 }
  0xfa   : > { %v600_v44 = vmul.f32 %v563_v25, %v528_v27  ;;  %v608_v45 = vmul.f32 %v563_v25, %v536_v28  ;;  %v616_v46 = vmul.f32 %v563_v25, %v544_v29  ;;  %v624_v47 = vmul.f32 %v563_v25, %v552_v30  ;;  %v664_v25 = vld [vmem:[%s1632_s1] sm:$0xff] }
  0xfb   : > { %v496_v51 = vmul.f32 %v459_v26, %v424_v31  ;;  %v504_v52 = vmul.f32 %v459_v26, %v432_v32  ;;  %v512_v53 = vmul.f32 %v459_v26, %v440_v33  ;;  %v520_v54 = vmul.f32 %v459_v26, %v448_v34  ;;  %v672_v26 = vld [vmem:[%s1632_s1 + $0x40] sm:$0xff]  ;;  %v531_v33 = vld [vmem:[%s1529_s30 + $0x18] sm:$0xff] }
  0xfc   : > { %v680_v27 = vld [vmem:[%s1632_s1 + $0x80] sm:$0xff]  ;;  %v539_v34 = vld [vmem:[%s1529_s30 + $0x58] sm:$0xff] }
  0xfd   : > { %v568_v36 = vpop.permute.xlu1 %567  ;;  %v464_v37 = vpop.permute.xlu0 %463  ;;  %v632_v21 = vadd.f32 %v600_v44, %v496_v51  ;;  %v640_v22 = vadd.f32 %v608_v45, %v504_v52  ;;  %v648_v23 = vadd.f32 %v616_v46, %v512_v53  ;;  %v656_v24 = vadd.f32 %v624_v47, %v520_v54  ;;  %v688_v32 = vld [vmem:[%s1632_s1 + $0xc0] sm:$0xff] }
  0xfe   : > { %v601_v60 = vmul.f32 %v568_v36, %v529_v35  ;;  %v609_v61 = vmul.f32 %v568_v36, %v537_v38  ;;  %v617_v62 = vmul.f32 %v568_v36, %v545_v39  ;;  %v625_v63 = vmul.f32 %v568_v36, %v553_v40  ;;  %v547_v39 = vld [vmem:[%s1529_s30 + $0x98] sm:$0xff] }
  0xff   : > { %v497_v3 = vmul.f32 %v464_v37, %v425_v41  ;;  %v505_v4 = vmul.f32 %v464_v37, %v433_v42  ;;  %v513_v5 = vmul.f32 %v464_v37, %v441_v43  ;;  %v521_v6 = vmul.f32 %v464_v37, %v449_v48  ;;  %v555_v40 = vld [vmem:[%s1529_s30 + $0xd8] sm:$0xff] }
 0x100   : > { %v427_v42 = vld [vmem:[%s1521_s27 + $0x18] sm:$0xff] }
 0x101   : > { %v573_v57 = vpop.permute.xlu1 %572  ;;  %v469_v59 = vpop.permute.xlu0 %468  ;;  %v633_v28 = vadd.f32 %v601_v60, %v497_v3  ;;  %v641_v29 = vadd.f32 %v609_v61, %v505_v4  ;;  %v649_v30 = vadd.f32 %v617_v62, %v513_v5  ;;  %v657_v31 = vadd.f32 %v625_v63, %v521_v6  ;;  %v435_v48 = vld [vmem:[%s1521_s27 + $0x58] sm:$0xff]  ;;  %v690_v3 = vld [vmem:[%s1632_s1 + $0xd0] sm:$0xff] }
 0x102   : > { %v602_v7 = vmul.f32 %v573_v57, %v530_v49  ;;  %v610_v8 = vmul.f32 %v573_v57, %v538_v50  ;;  %v618_v9 = vmul.f32 %v573_v57, %v546_v55  ;;  %v626_v10 = vmul.f32 %v573_v57, %v554_v56  ;;  %v443_v49 = vld [vmem:[%s1521_s27 + $0x98] sm:$0xff] }
 0x103   : > { %v498_v11 = vmul.f32 %v469_v59, %v426_v58  ;;  %v506_v12 = vmul.f32 %v469_v59, %v434_v0  ;;  %v514_v13 = vmul.f32 %v469_v59, %v442_v1  ;;  %v522_v14 = vmul.f32 %v469_v59, %v450_v2  ;;  %v451_v50 = vld [vmem:[%s1521_s27 + $0xd8] sm:$0xff]  ;;  %v666_v59 = vld [vmem:[%s1632_s1 + $0x10] sm:$0xff] }
 0x104   : > { %v674_v1 = vld [vmem:[%s1632_s1 + $0x50] sm:$0xff] }
 0x105   : > { %v704_v16 = vpop.permute.xlu1 %703  ;;  %v699_v17 = vpop.permute.xlu0 %698  ;;  %v634_v35 = vadd.f32 %v602_v7, %v498_v11  ;;  %v642_v36 = vadd.f32 %v610_v8, %v506_v12  ;;  %v650_v37 = vadd.f32 %v618_v9, %v514_v13  ;;  %v658_v38 = vadd.f32 %v626_v10, %v522_v14  ;;  %v682_v2 = vld [vmem:[%s1632_s1 + $0x90] sm:$0xff]  ;;  %v667_v13 = vld [vmem:[%s1632_s1 + $0x18] sm:$0xff] }
 0x106   : > { %v737_v44 = vmul.f32 %v704_v16, %v665_v15  ;;  %v745_v45 = vmul.f32 %v704_v16, %v673_v18  ;;  %v753_v46 = vmul.f32 %v704_v16, %v681_v19  ;;  %v761_v47 = vmul.f32 %v704_v16, %v689_v20  ;;  %v675_v18 = vld [vmem:[%s1632_s1 + $0x58] sm:$0xff] }
 0x107   : > { %v736_v51 = vmul.f32 %v699_v17, %v664_v25  ;;  %v744_v52 = vmul.f32 %v699_v17, %v672_v26  ;;  %v752_v53 = vmul.f32 %v699_v17, %v680_v27  ;;  %v760_v54 = vmul.f32 %v699_v17, %v688_v32  ;;  %v683_v19 = vld [vmem:[%s1632_s1 + $0x98] sm:$0xff]  ;;  %v436_v32 = vld [vmem:[%s1521_s27 + $0x60] sm:$0xff] }
 0x108   : > { %v769_v5 = vadd.f32 %v737_v44, %v633_v28  ;;  %v777_v6 = vadd.f32 %v745_v45, %v641_v29  ;;  %v785_v7 = vadd.f32 %v753_v46, %v649_v30  ;;  %v793_v8 = vadd.f32 %v761_v47, %v657_v31  ;;  %v691_v20 = vld [vmem:[%s1632_s1 + $0xd8] sm:$0xff] }
 0x109   : > { %v578_v41 = vpop.permute.xlu1 %577  ;;  %v474_v43 = vpop.permute.xlu0 %473  ;;  %v768_v9 = vadd.f32 %v736_v51, %v632_v21  ;;  %v776_v10 = vadd.f32 %v744_v52, %v640_v22  ;;  %v784_v11 = vadd.f32 %v752_v53, %v648_v23  ;;  %v792_v12 = vadd.f32 %v760_v54, %v656_v24  ;;  %v428_v23 = vld [vmem:[%s1521_s27 + $0x20] sm:$0xff] }
 0x10a   : > { %v603_v55 = vmul.f32 %v578_v41, %v531_v33  ;;  %v611_v56 = vmul.f32 %v578_v41, %v539_v34  ;;  %v619_v57 = vmul.f32 %v578_v41, %v547_v39  ;;  %v627_v58 = vmul.f32 %v578_v41, %v555_v40  ;;  %v444_v33 = vld [vmem:[%s1521_s27 + $0xa0] sm:$0xff] }
 0x10b   : > { %v499_v60 = vmul.f32 %v474_v43, %v427_v42  ;;  %v507_v61 = vmul.f32 %v474_v43, %v435_v48  ;;  %v515_v62 = vmul.f32 %v474_v43, %v443_v49  ;;  %v523_v63 = vmul.f32 %v474_v43, %v451_v50  ;;  %v452_v34 = vld [vmem:[%s1521_s27 + $0xe0] sm:$0xff] }
 0x10c   : > { %v800_v43 = vadd.f32 %v769_v5, %v768_v9  ;;  %v813_v44 = vadd.f32 %v777_v6, %v776_v10  ;;  %v826_v45 = vadd.f32 %v785_v7, %v784_v11  ;;  %v839_v46 = vadd.f32 %v793_v8, %v792_v12  ;;  %v540_v48 = vld [vmem:[%s1529_s30 + $0x60] sm:$0xff]  ;;  %v437_v7 = vld [vmem:[%s1521_s27 + $0x68] sm:$0xff] }
 0x10d   : > { %v479_v0 = vpop.permute.xlu1 %478  ;;  %v709_v4 = vpop.permute.xlu0 %708  ;;  %v635_v25 = vadd.f32 %v603_v55, %v499_v60  ;;  %v643_v26 = vadd.f32 %v611_v56, %v507_v61  ;;  %v651_v27 = vadd.f32 %v619_v57, %v515_v62  ;;  %v659_v28 = vadd.f32 %v627_v58, %v523_v63  ;;  %v548_v49 = vld [vmem:[%s1529_s30 + $0xa0] sm:$0xff]  ;;  %v533_v57 = vld [vmem:[%s1529_s30 + $0x28] sm:$0xff] }
 0x10e   : > { %v738_v14 = vmul.f32 %v709_v4, %v666_v59  ;;  %v746_v15 = vmul.f32 %v709_v4, %v674_v1  ;;  %v754_v16 = vmul.f32 %v709_v4, %v682_v2  ;;  %v762_v17 = vmul.f32 %v709_v4, %v690_v3  ;;  %v556_v50 = vld [vmem:[%s1529_s30 + $0xe0] sm:$0xff]  ;;  %v541_v58 = vld [vmem:[%s1529_s30 + $0x68] sm:$0xff] }
 0x10f   : > { %v500_v53 = vmul.f32 %v479_v0, %v428_v23  ;;  %v508_v54 = vmul.f32 %v479_v0, %v436_v32  ;;  %v516_v55 = vmul.f32 %v479_v0, %v444_v33  ;;  %v524_v56 = vmul.f32 %v479_v0, %v452_v34  ;;  %v549_v63 = vld [vmem:[%s1529_s30 + $0xa8] sm:$0xff] }
 0x110   : > { %v770_v24 = vadd.f32 %v738_v14, %v634_v35  ;;  %v778_v29 = vadd.f32 %v746_v15, %v642_v36  ;;  %v786_v30 = vadd.f32 %v754_v16, %v650_v37  ;;  %v794_v31 = vadd.f32 %v762_v17, %v658_v38  ;;  %v532_v35 = vld [vmem:[%s1529_s30 + $0x20] sm:$0xff]  ;;  %v557_v1 = vld [vmem:[%s1529_s30 + $0xe8] sm:$0xff] }
 0x111   : > { %v714_v21 = vpop.permute.xlu1 %713  ;;  %v583_v22 = vpop.permute.xlu0 %582  ;;  %v429_v2 = vld [vmem:[%s1521_s27 + $0x28] sm:$0xff]  ;;  %v668_v15 = vld [vmem:[%s1632_s1 + $0x20] sm:$0xff] }
 0x112   : > { %v739_v39 = vmul.f32 %v714_v21, %v667_v13  ;;  %v747_v40 = vmul.f32 %v714_v21, %v675_v18  ;;  %v755_v41 = vmul.f32 %v714_v21, %v683_v19  ;;  %v763_v42 = vmul.f32 %v714_v21, %v691_v20  ;;  %v445_v0 = vld [vmem:[%s1521_s27 + $0xa8] sm:$0xff]  ;;  %v430_v13 = vld [vmem:[%s1521_s27 + $0x30] sm:$0xff] }
 0x113   : > { %v801_v59 = vadd.f32 %v800_v43, %v770_v24  ;;  %v814_v60 = vadd.f32 %v813_v44, %v778_v29  ;;  %v827_v61 = vadd.f32 %v826_v45, %v786_v30  ;;  %v840_v62 = vadd.f32 %v839_v46, %v794_v31  ;;  %v453_v8 = vld [vmem:[%s1521_s27 + $0xe8] sm:$0xff]  ;;  %v438_v24 = vld [vmem:[%s1521_s27 + $0x70] sm:$0xff] }
 0x114   : > { %v771_v36 = vadd.f32 %v739_v39, %v635_v25  ;;  %v779_v37 = vadd.f32 %v747_v40, %v643_v26  ;;  %v787_v38 = vadd.f32 %v755_v41, %v651_v27  ;;  %v795_v47 = vadd.f32 %v763_v42, %v659_v28  ;;  %v676_v25 = vld [vmem:[%s1632_s1 + $0x60] sm:$0xff]  ;;  %v446_v29 = vld [vmem:[%s1521_s27 + $0xb0] sm:$0xff]  ;;  %v669_v39 = vld [vmem:[%s1632_s1 + $0x28] sm:$0xff] }
 0x115   : > { %v588_v51 = vpop.permute.xlu1 %587  ;;  %v484_v52 = vpop.permute.xlu0 %483  ;;  %v604_v3 = vmul.f32 %v583_v22, %v532_v35  ;;  %v612_v4 = vmul.f32 %v583_v22, %v540_v48  ;;  %v620_v5 = vmul.f32 %v583_v22, %v548_v49  ;;  %v628_v6 = vmul.f32 %v583_v22, %v556_v50  ;;  %v684_v26 = vld [vmem:[%s1632_s1 + $0xa0] sm:$0xff]  ;;  %v454_v30 = vld [vmem:[%s1521_s27 + $0xf0] sm:$0xff]  ;;  %v677_v44 = vld [vmem:[%s1632_s1 + $0x68] sm:$0xff] }
 0x116   : > { %v1674_v9 = vadd.f32 %v801_v59, %v771_v36  ;;  %v1676_v10 = vadd.f32 %v814_v60, %v779_v37  ;;  %v1678_v11 = vadd.f32 %v827_v61, %v787_v38  ;;  %v1680_v12 = vadd.f32 %v840_v62, %v795_v47  ;;  %v692_v27 = vld [vmem:[%s1632_s1 + $0xe0] sm:$0xff]  ;;  %v685_v45 = vld [vmem:[%s1632_s1 + $0xa8] sm:$0xff]  ;;  %v534_v49 = vld [vmem:[%s1529_s30 + $0x30] sm:$0xff] }
 0x117   : > { %v605_v17 = vmul.f32 %v588_v51, %v533_v57  ;;  %v613_v18 = vmul.f32 %v588_v51, %v541_v58  ;;  %v621_v19 = vmul.f32 %v588_v51, %v549_v63  ;;  %v629_v20 = vmul.f32 %v588_v51, %v557_v1  ;;  %v693_v46 = vld [vmem:[%s1632_s1 + $0xe8] sm:$0xff]  ;;  %v542_v50 = vld [vmem:[%s1529_s30 + $0x70] sm:$0xff]  ;;  %v535_v57 = vld [vmem:[%s1529_s30 + $0x38] sm:$0xff] }
 0x118   : > { %v501_v28 = vmul.f32 %v484_v52, %v429_v2  ;;  %v509_v21 = vmul.f32 %v484_v52, %v437_v7  ;;  %v517_v22 = vmul.f32 %v484_v52, %v445_v0  ;;  %v525_v23 = vmul.f32 %v484_v52, %v453_v8  ;;  %v550_v51 = vld [vmem:[%s1529_s30 + $0xb0] sm:$0xff]  ;;  %v543_v58 = vld [vmem:[%s1529_s30 + $0x78] sm:$0xff] }
 0x119   : > { %v489_v14 = vpop.permute.xlu1 %488  ;;  %v719_v16 = vpop.permute.xlu0 %718  ;;  %v636_v31 = vadd.f32 %v604_v3, %v500_v53  ;;  %v644_v32 = vadd.f32 %v612_v4, %v508_v54  ;;  %v652_v33 = vadd.f32 %v620_v5, %v516_v55  ;;  %v660_v34 = vadd.f32 %v628_v6, %v524_v56  ;;  %v558_v56 = vld [vmem:[%s1529_s30 + $0xf0] sm:$0xff]  ;;  %v551_v63 = vld [vmem:[%s1529_s30 + $0xb8] sm:$0xff] }
 0x11a   : > { %v740_v40 = vmul.f32 %v719_v16, %v668_v15  ;;  %v748_v41 = vmul.f32 %v719_v16, %v676_v25  ;;  %v756_v42 = vmul.f32 %v719_v16, %v684_v26  ;;  %v764_v43 = vmul.f32 %v719_v16, %v692_v27  ;;  %v559_v1 = vld [vmem:[%s1529_s30 + $0xf8] sm:$0xff] }
 0x11b   : > { %v502_v37 = vmul.f32 %v489_v14, %v430_v13  ;;  %v510_v38 = vmul.f32 %v489_v14, %v438_v24  ;;  %v518_v47 = vmul.f32 %v489_v14, %v446_v29  ;;  %v526_v48 = vmul.f32 %v489_v14, %v454_v30  ;;  %v431_v2 = vld [vmem:[%s1521_s27 + $0x38] sm:$0xff] }
 0x11c   : > { %v637_v52 = vadd.f32 %v605_v17, %v501_v28  ;;  %v645_v53 = vadd.f32 %v613_v18, %v509_v21  ;;  %v653_v54 = vadd.f32 %v621_v19, %v517_v22  ;;  %v661_v55 = vadd.f32 %v629_v20, %v525_v23  ;;  %v439_v0 = vld [vmem:[%s1521_s27 + $0x78] sm:$0xff] }
 0x11d   : > { %v724_v35 = vpop.permute.xlu1 %723  ;;  %v593_v36 = vpop.permute.xlu0 %592  ;;  %v772_v3 = vadd.f32 %v740_v40, %v636_v31  ;;  %v780_v4 = vadd.f32 %v748_v41, %v644_v32  ;;  %v788_v5 = vadd.f32 %v756_v42, %v652_v33  ;;  %v796_v6 = vadd.f32 %v764_v43, %v660_v34  ;;  %v447_v8 = vld [vmem:[%s1521_s27 + $0xb8] sm:$0xff] }
 0x11e   : > { %v741_v59 = vmul.f32 %v724_v35, %v669_v39  ;;  %v749_v60 = vmul.f32 %v724_v35, %v677_v44  ;;  %v757_v61 = vmul.f32 %v724_v35, %v685_v45  ;;  %v765_v62 = vmul.f32 %v724_v35, %v693_v46  ;;  %v455_v13 = vld [vmem:[%s1521_s27 + $0xf8] sm:$0xff]  ;;  %v670_v44 = vld [vmem:[%s1632_s1 + $0x30] sm:$0xff] }
 0x11f   : > { %v606_v15 = vmul.f32 %v593_v36, %v534_v49  ;;  %v614_v16 = vmul.f32 %v593_v36, %v542_v50  ;;  %v622_v17 = vmul.f32 %v593_v36, %v550_v51  ;;  %v630_v18 = vmul.f32 %v593_v36, %v558_v56  ;;  %v671_v31 = vld [vmem:[%s1632_s1 + $0x38] sm:$0xff] }
 0x120   : > { %v773_v23 = vadd.f32 %v741_v59, %v637_v52  ;;  %v781_v24 = vadd.f32 %v749_v60, %v645_v53  ;;  %v789_v29 = vadd.f32 %v757_v61, %v653_v54  ;;  %v797_v30 = vadd.f32 %v765_v62, %v661_v55  ;;  %v679_v32 = vld [vmem:[%s1632_s1 + $0x78] sm:$0xff] }
 0x121   : > { %v598_v7 = vpop.permute.xlu1 %597  ;;  %v494_v14 = vpop.permute.xlu0 %493  ;;  %v803_v33 = vadd.f32 %v1674_v9, %v772_v3  ;;  %v816_v34 = vadd.f32 %v1676_v10, %v780_v4  ;;  %v829_v39 = vadd.f32 %v1678_v11, %v788_v5  ;;  %v842_v40 = vadd.f32 %v1680_v12, %v796_v6  ;;  %v687_v41 = vld [vmem:[%s1632_s1 + $0xb8] sm:$0xff]  ;;  %v678_v9 = vld [vmem:[%s1632_s1 + $0x70] sm:$0xff] }
 0x122   : > { %v607_v19 = vmul.f32 %v598_v7, %v535_v57  ;;  %v615_v20 = vmul.f32 %v598_v7, %v543_v58  ;;  %v623_v25 = vmul.f32 %v598_v7, %v551_v63  ;;  %v631_v26 = vmul.f32 %v598_v7, %v559_v1  ;;  %v695_v42 = vld [vmem:[%s1632_s1 + $0xf8] sm:$0xff]  ;;  %v686_v10 = vld [vmem:[%s1632_s1 + $0xb0] sm:$0xff] }
 0x123   : > { %v503_v27 = vmul.f32 %v494_v14, %v431_v2  ;;  %v511_v28 = vmul.f32 %v494_v14, %v439_v0  ;;  %v519_v21 = vmul.f32 %v494_v14, %v447_v8  ;;  %v527_v22 = vmul.f32 %v494_v14, %v455_v13  ;;  %v694_v11 = vld [vmem:[%s1632_s1 + $0xf0] sm:$0xff] }
 0x124   : > { %v638_v45 = vadd.f32 %v606_v15, %v502_v37  ;;  %v646_v46 = vadd.f32 %v614_v16, %v510_v38  ;;  %v654_v35 = vadd.f32 %v622_v17, %v518_v47  ;;  %v662_v36 = vadd.f32 %v630_v18, %v526_v48  ;;  %v852_v17 = vld [vmem:[%s397_s23] sm:$0x1] }
 0x125   : > { %v734_v43 = vpop.permute.xlu1 %733  ;;  %v729_v49 = vpop.permute.xlu0 %728  ;;  %v639_v12 = vadd.f32 %v607_v19, %v503_v27  ;;  %v647_v50 = vadd.f32 %v615_v20, %v511_v28  ;;  %v655_v51 = vadd.f32 %v623_v25, %v519_v21  ;;  %v663_v52 = vadd.f32 %v631_v26, %v527_v22  ;;  %v853_v26 = vld [vmem:[%s397_s23 + $0x1] sm:$0x1]  ;;  %v854_v27 = vld [vmem:[%s397_s23 + $0x2] sm:$0x1]  ;;  %v855_v28 = vld [vmem:[%s397_s23 + $0x3] sm:$0x1] }
 0x126   : > { %v743_v53 = vmul.f32 %v734_v43, %v671_v31  ;;  %v751_v54 = vmul.f32 %v734_v43, %v679_v32  ;;  %v759_v55 = vmul.f32 %v734_v43, %v687_v41  ;;  %v767_v56 = vmul.f32 %v734_v43, %v695_v42 }
 0x127   : > { %v742_v57 = vmul.f32 %v729_v49, %v670_v44  ;;  %v750_v58 = vmul.f32 %v729_v49, %v678_v9  ;;  %v758_v37 = vmul.f32 %v729_v49, %v686_v10  ;;  %v766_v38 = vmul.f32 %v729_v49, %v694_v11 }
 0x128   : > { %v804_v47 = vadd.f32 %v803_v33, %v773_v23  ;;  %v817_v48 = vadd.f32 %v816_v34, %v781_v24  ;;  %v830_v59 = vadd.f32 %v829_v39, %v789_v29  ;;  %v843_v60 = vadd.f32 %v842_v40, %v797_v30 }
 0x129   : > { %v774_v61 = vadd.f32 %v742_v57, %v638_v45  ;;  %v782_v62 = vadd.f32 %v750_v58, %v646_v46  ;;  %v790_v63 = vadd.f32 %v758_v37, %v654_v35  ;;  %v798_v1 = vadd.f32 %v766_v38, %v662_v36 }
 0x12a   : > { %v775_v2 = vadd.f32 %v743_v53, %v639_v12  ;;  %v783_v3 = vadd.f32 %v751_v54, %v647_v50  ;;  %v791_v4 = vadd.f32 %v759_v55, %v655_v51  ;;  %v799_v5 = vadd.f32 %v767_v56, %v663_v52 }
 0x12b   : > { %v805_v6 = vadd.f32 %v804_v47, %v774_v61  ;;  %v818_v7 = vadd.f32 %v817_v48, %v782_v62  ;;  %v831_v0 = vadd.f32 %v830_v59, %v790_v63  ;;  %v844_v8 = vadd.f32 %v843_v60, %v798_v1 }
 0x12c   : > { %v860_v29 = vsub.f32 1.0, %v852_v17  ;;  %v861_v34 = vsub.f32 1.0, %v853_v26  ;;  %v862_v39 = vsub.f32 1.0, %v854_v27  ;;  %v863_v40 = vsub.f32 1.0, %v855_v28 }
 0x12d   : > { %v806_v13 = vadd.f32 %v805_v6, %v775_v2  ;;  %v819_v14 = vadd.f32 %v818_v7, %v783_v3  ;;  %v832_v15 = vadd.f32 %v831_v0, %v791_v4  ;;  %v845_v16 = vadd.f32 %v844_v8, %v799_v5 }
 0x12e   : > { %v864_v45 = vmul.f32 -1e+30, %v860_v29  ;;  %v865_v10 = vmul.f32 -1e+30, %v861_v34  ;;  %v866_v11 = vmul.f32 -1e+30, %v862_v39 }
 0x12f   : > { %v807_v18 = vrot.slane %v806_v13, 4  ;;  %v820_v19 = vrot.slane %v819_v14, 4  ;;  %v833_v20 = vrot.slane %v832_v15, 4  ;;  %v846_v25 = vrot.slane %v845_v16, 4 }
 0x130   : > { %v867_v49 = vmul.f32 -1e+30, %v863_v40 }
 0x131   : > { %v808_v21 = vadd.f32 %v807_v18, %v806_v13  ;;  %v821_v22 = vadd.f32 %v820_v19, %v819_v14  ;;  %v834_v23 = vadd.f32 %v833_v20, %v832_v15  ;;  %v847_v24 = vadd.f32 %v846_v25, %v845_v16 }
 0x133   : > { %v809_v30 = vrot.slane %v808_v21, 2  ;;  %v822_v31 = vrot.slane %v821_v22, 2  ;;  %v835_v32 = vrot.slane %v834_v23, 2  ;;  %v848_v33 = vrot.slane %v847_v24, 2 }
 0x135   : > { %v810_v41 = vadd.f32 %v809_v30, %v808_v21  ;;  %v823_v42 = vadd.f32 %v822_v31, %v821_v22  ;;  %v836_v43 = vadd.f32 %v835_v32, %v834_v23  ;;  %v849_v44 = vadd.f32 %v848_v33, %v847_v24 }
 0x137   : > { %v811_v46 = vrot.slane %v810_v41, 1  ;;  %v824_v35 = vrot.slane %v823_v42, 1  ;;  %v837_v36 = vrot.slane %v836_v43, 1  ;;  %v850_v9 = vrot.slane %v849_v44, 1 }
 0x139   : > { %v812_v12 = vadd.f32 %v811_v46, %v810_v41  ;;  %v825_v50 = vadd.f32 %v824_v35, %v823_v42  ;;  %v838_v51 = vadd.f32 %v837_v36, %v836_v43  ;;  %v851_v52 = vadd.f32 %v850_v9, %v849_v44 }
 0x13b   : > { %v856_v53 = vmul.f32 %v852_v17, %v812_v12  ;;  %v857_v54 = vmul.f32 %v853_v26, %v825_v50  ;;  %v858_v55 = vmul.f32 %v854_v27, %v838_v51  ;;  %v859_v56 = vmul.f32 %v855_v28, %v851_v52 }
 0x13d   : > { %v868_v57 = vadd.f32 %v864_v45, %v856_v53  ;;  %v869_v58 = vadd.f32 %v865_v10, %v857_v54  ;;  %v870_v37 = vadd.f32 %v866_v11, %v858_v55  ;;  %v871_v38 = vadd.f32 %v867_v49, %v859_v56 }
 0x13f   : > { %872 = vst [vmem:[%s390_s16] sm:$0x1] %v868_v57  ;;  %873 = vst [vmem:[%s390_s16 + $0x1] sm:$0x1] %v869_v58 }
 0x140   : > { %874 = vst [vmem:[%s390_s16 + $0x2] sm:$0x1] %v870_v37  ;;  %875 = vst [vmem:[%s390_s16 + $0x3] sm:$0x1] %v871_v38 }
 0x141   : > { %1214 = shalt.err (!%p1211_p11)
}
 0x142   : > { %s1215_s22 = scalar_lea.hbm %s1737_s17, 64  ;;  %s1219_s27 = scalar_lea.hbm %s1790_s7, 128 }
 0x143   : > { %p1216_p4 = scmp.ne.s32.totalorder %s1737_s17, %s1215_s22  ;;  %p1220_p2 = scmp.lt.u32.totalorder %s1737_s17, %s1790_s7 }
 0x144   : > { %p1221_p1 = scmp.lt.u32.totalorder %s1219_s27, %s1215_s22  ;;  %p1223_p7 = scmp.lt.u32.totalorder %s1215_s22, %s1737_s17 }
 0x145   : > { %p1217_p3 = pnand %p1216_p4, %p1821_p6 }
 0x146   : > { %p1222_p13 = por %p1221_p1, %p1220_p2 }
 0x147   : > { %p1218_p5 = pneg %p1217_p3 }
 0x148   : > { %p1224_p9 = por %p1223_p7, %p1222_p13 }
 0x14a   : > { %p1225_p12 = pnand %p1224_p9, %p1218_p5 }
 0x14c   : > { %1228 = shalt.err (!%p1225_p12)
}
 0x14d   : > { %s1280_s23 = smov 16   ;;  %s1281_s15 = smov 1  }
 0x14e   : > { %1054 = dma.vmem_to_hbm [thread:$0]  (%p1821_p6), %s1739_s0, 64, %s1737_s17, %s877_s28, %s1280_s23, %s1280_s23, %s1281_s15  }
 0x14f PF: > { %s1822_s11 = sld [smem:[#allocation12_spill]]  ;;  %s905_s16 = sand.u32 1, %s1259_s24  }
 0x150   : > { %p1823_p0 = scmp.ne.s32.totalorder %s1808_s13, 0  ;;  %s906_s8 = scalar_lea.sflag [#allocation4], %s905_s16 }
 0x155   : > { %p1824_p8 = scmp.ge.s32.totalorder %s1822_s11, 2 }
 0x157   : > { %p1067_p10 = pnand %p1824_p8, %p1823_p0 }
 0x159   : > { %1254 = dma.done.wait (!%p1067_p10), %s906_s8, 64  }
 0x15a   : > { %1256 = vsyncadd (!%p1067_p10), %s906_s8, 4294967232  ;;  %s1825_s27 = sld [smem:[#allocation13_spill]]  ;;  %s1826_s18 = sld [smem:[#allocation14_spill]] }
 0x15b   : > { %s1827_s24 = smov %s1263_s25  ;;  %s1828_s25 = smov %s1267_s26 }
 0x160   : > { %p23_p11 = scmp.ge.s32.totalorder %s1825_s27, 4   ;;  %s1829_s26 = smov %s1826_s18 }
 0x162   :  { %25 = sbr.rel (!%p23_p11) target bundleno = 10 (0xa), region = 120 }
 0x169   :  { %911 = vsyncpa [#allocation3], 1 }
 0x16a   :  { %913 = vsyncpa [#allocation3 + $0x1], 1 }
 0x16b   :  { %914 = vsyncpa [#allocation6], 1 }
 0x16c   :  { %916 = vsyncpa [#allocation6 + $0x1], 1 }
 0x16d   :  { %917 = vsyncpa [#allocation4], 1 }
 0x16e   :  { %919 = vsyncpa [#allocation4 + $0x1], 1 }

</bundles_post_ra>
